<compile_context>
chip_gen: v6e
topology: v6e:2x2x1
jax: 0.10.0
libtpu: 0.0.40
codegen_flags: <defaults>
</compile_context>

<pallas_src>
import numpy as np
import jax
import jax.numpy as jnp
from jax.experimental import pallas as pl
from jax.experimental.pallas import tpu as pltpu

EPS = 1e-5


# ---------------------------------------------------------------------------
# Fused SPADE kernel: one grid step, everything on (., N*HW) lane-dense slabs.
# ---------------------------------------------------------------------------
def _make_spade_kernel(H, W):
    def kernel(x_ref, pvec_ref, p1_ref, ws_ref, wgb_ref, mask_ref, out_ref):
        C = x_ref.shape[0]
        NHW = x_ref.shape[1]
        C2 = 2 * C

        # Packed per-channel constants: [scale(C); shift(C); bg(C); bb(C)].
        pv = pvec_ref[...]                                   # (4C, 1) f32
        scale = pv[0:C]
        shift = pv[C:2 * C]
        gb_bias = pv[2 * C:4 * C]                            # (2C, 1)

        # BatchNorm (affine=False): per-channel scale/shift from batch stats.
        normed = x_ref[...] * scale + shift                  # (C, NHW) f32

        # conv1: shared = relu(Ws_aug @ im2col_aug(seg)); bias folded into the
        # matmul via the ones-row / bias-column augmentation.
        shared = jnp.dot(ws_ref[...], p1_ref[...],
                         preferred_element_type=jnp.float32)  # (hidden, NHW)
        shared = jnp.maximum(shared, 0.0).astype(jnp.bfloat16)

        # conv2 (gamma & beta fused): ONE matmul yields all 9 tap outputs.
        taps = jnp.dot(wgb_ref[...], shared,
                       preferred_element_type=jnp.float32)    # (9*2C, NHW) f32

        masks = mask_ref[...]                                 # (9*2C, NHW) f32

        # Each tap output is moved to its target pixels by an XLU lane roll and
        # edge-masked on the VPU; accumulation stays exact in f32.  The roll is
        # circular over the concatenated-batch lane axis, but every position
        # that would read across an image/batch boundary has mask == 0.
        gb = jnp.broadcast_to(gb_bias, (C2, NHW))             # seeded with bias
        for k in range(9):
            dy, dx = k // 3 - 1, k % 3 - 1
            d = dy * W + dx
            t = taps[k * C2:(k + 1) * C2, :]
            if d != 0:
                t = pltpu.roll(t, shift=(-d) % NHW, axis=1)
                t = t * masks[k * C2:(k + 1) * C2, :]
            gb = gb + t

        out_ref[...] = normed * (1.0 + gb[:C, :]) + gb[C:, :]

    return kernel


def spade_pallas(x_flat, pvec, p1, ws, wgb, masks, H, W):
    C, NHW = x_flat.shape
    kernel = _make_spade_kernel(H, W)
    return pl.pallas_call(
        kernel,
        grid=(1,),                                           # single step: tiny problem
        in_specs=[
            pl.BlockSpec(x_flat.shape, lambda i: (0, 0)),    # x      (C, NHW)   f32
            pl.BlockSpec(pvec.shape, lambda i: (0, 0)),      # consts (4C, 1)    f32
            pl.BlockSpec(p1.shape, lambda i: (0, 0)),        # im2col (K1p, NHW) bf16
            pl.BlockSpec(ws.shape, lambda i: (0, 0)),        # Ws_aug (hid, K1p) bf16
            pl.BlockSpec(wgb.shape, lambda i: (0, 0)),       # Wgb    (9*2C,hid) bf16
            pl.BlockSpec(masks.shape, lambda i: (0, 0)),     # masks  (9*2C,NHW) f32
        ],
        out_specs=pl.BlockSpec(x_flat.shape, lambda i: (0, 0)),
        out_shape=jax.ShapeDtypeStruct((C, NHW), jnp.float32),
        compiler_params=pltpu.CompilerParams(
            dimension_semantics=("arbitrary",)),
    )(x_flat, pvec, p1, ws, wgb, masks)


# ---------------------------------------------------------------------------
# Wrapper-side glue (layout plumbing + tiny BN reduction + bilinear gather).
# ---------------------------------------------------------------------------
def _conv_edge_masks(H, W, N, C2):
    """(9*C2, N*HW) 0/1 masks: row block k (replicated over C2 sublanes) marks
    output pixels whose tap-k neighbour lies inside the HxW image (implicit
    SAME zero padding; also zeroes roll wrap-around across batch boundaries)."""
    HW = H * W
    p = np.arange(HW)
    y, x = p // W, p % W
    rows = []
    for ky in range(3):
        for kx in range(3):
            dy, dx = ky - 1, kx - 1
            m = ((y + dy >= 0) & (y + dy < H) &
                 (x + dx >= 0) & (x + dx < W)).astype(np.float32)
            rows.append(np.tile(m, N))
    masks = np.stack(rows, axis=0)                            # (9, N*HW)
    return np.repeat(masks[:, None, :], C2, axis=1).reshape(9 * C2, N * HW)


def bilinear_resize_nchw(x, out_h, out_w):
    # TODO(synk): F.interpolate(mode='bilinear', align_corners=False) is a
    # data-dependent gather; kept as plain-JAX glue rather than a Pallas kernel.
    n, c, in_h, in_w = x.shape
    ys = (jnp.arange(out_h, dtype=jnp.float32) + 0.5) * (in_h / out_h) - 0.5
    xs = (jnp.arange(out_w, dtype=jnp.float32) + 0.5) * (in_w / out_w) - 0.5
    ys = jnp.clip(ys, 0.0, in_h - 1)
    xs = jnp.clip(xs, 0.0, in_w - 1)
    y0 = jnp.floor(ys).astype(jnp.int32); y1 = jnp.minimum(y0 + 1, in_h - 1)
    x0 = jnp.floor(xs).astype(jnp.int32); x1 = jnp.minimum(x0 + 1, in_w - 1)
    wy = (ys - y0.astype(jnp.float32))[None, None, :, None]
    wx = (xs - x0.astype(jnp.float32))[None, None, None, :]

    def gather(yi, xi):
        return x[:, :, yi, :][:, :, :, xi]

    top = gather(y0, x0) * (1 - wx) + gather(y0, x1) * wx
    bot = gather(y1, x0) * (1 - wx) + gather(y1, x1) * wx
    return top * (1 - wy) + bot * wy


@jax.jit
def spade_forward(x_nchw, seg_nchw, params):
    """Matches Spade.forward(x, input) in training mode; NCHW in / NCHW out."""
    N, C, H, W = x_nchw.shape
    HW = H * W
    NHW = N * HW
    Cin = params["ws"].shape[2]
    hidden = params["ws"].shape[3]

    x32 = x_nchw.astype(jnp.float32)

    # --- BatchNorm2d(affine=False), training-mode batch statistics ----------
    # (Tiny per-channel reduction: done with plain jnp — a standalone Pallas
    #  stats kernel at C=4 is pure launch overhead.)
    mean = jnp.mean(x32, axis=(0, 2, 3))
    var = jnp.var(x32, axis=(0, 2, 3))                       # biased variance
    scale = jax.lax.rsqrt(var + EPS)
    shift = -mean * scale

    # --- lane-dense layout: batch concatenated on the lane (HW) axis --------
    x_flat = jnp.transpose(x32, (1, 0, 2, 3)).reshape(C, NHW)  # (C, N*HW)

    # --- resize segmentation map + im2col it (tiny; layout plumbing) --------
    seg = bilinear_resize_nchw(seg_nchw.astype(jnp.float32), H, W)
    seg_pad = jnp.pad(seg, ((0, 0), (0, 0), (1, 1), (1, 1)))
    cols = [seg_pad[:, :, ky:ky + H, kx:kx + W]
            for ky in range(3) for kx in range(3)]           # 9 x (N,Cin,H,W)
    p1 = jnp.stack(cols, axis=0)                             # (9,N,Cin,H,W)
    p1 = jnp.transpose(p1, (0, 2, 1, 3, 4)).reshape(9 * Cin, NHW)
    # fold conv1 bias: ones row + pad K to a multiple of 8 for a clean layout
    K1 = 9 * Cin + 1
    K1p = ((K1 + 7) // 8) * 8
    p1 = jnp.concatenate(
        [p1, jnp.ones((1, NHW), jnp.float32),
         jnp.zeros((K1p - K1, NHW), jnp.float32)], axis=0).astype(jnp.bfloat16)

    # --- weights: transposed / gamma+beta fused, bf16 MXU operands ----------
    ws_t = jnp.transpose(params["ws"], (3, 0, 1, 2)).reshape(hidden, 9 * Cin)
    ws_aug = jnp.concatenate(
        [ws_t, params["bs"].reshape(hidden, 1),
         jnp.zeros((hidden, K1p - K1), jnp.float32)], axis=1).astype(jnp.bfloat16)

    wg_t = jnp.transpose(params["wg"], (0, 1, 3, 2)).reshape(9, C, hidden)
    wb_t = jnp.transpose(params["wb"], (0, 1, 3, 2)).reshape(9, C, hidden)
    wgb = jnp.concatenate([wg_t, wb_t], axis=1)              # (9, 2C, hidden)
    wgb = wgb.reshape(9 * 2 * C, hidden).astype(jnp.bfloat16)

    # packed per-channel constants: one small DMA instead of four
    pvec = jnp.concatenate([scale, shift, params["bg"], params["bb"]])
    pvec = pvec.reshape(4 * C, 1).astype(jnp.float32)

    masks = jnp.asarray(_conv_edge_masks(H, W, N, 2 * C), dtype=jnp.float32)

    out_flat = spade_pallas(x_flat, pvec, p1, ws_aug, wgb, masks, H, W)
    return jnp.transpose(out_flat.reshape(C, N, H, W), (1, 0, 2, 3))


# ---------------------------------------------------------------------------
# Pure-JAX reference (sanity check of the Pallas implementation)
# ---------------------------------------------------------------------------
def spade_reference(x_nchw, seg_nchw, params):
    N, C, H, W = x_nchw.shape
    seg = bilinear_resize_nchw(seg_nchw.astype(jnp.float32), H, W)
    mean = jnp.mean(x_nchw, axis=(0, 2, 3), keepdims=True)
    var = jnp.var(x_nchw, axis=(0, 2, 3), keepdims=True)
    normed = (x_nchw - mean) / jnp.sqrt(var + EPS)

    def conv(v, w, b):
        return jax.lax.conv_general_dilated(
            v, w, (1, 1), "SAME",
            dimension_numbers=("NCHW", "HWIO", "NCHW")) + b.reshape(1, -1, 1, 1)

    shared = jax.nn.relu(conv(seg, params["ws"], params["bs"]))
    gamma = conv(shared, params["wg"], params["bg"])
    beta = conv(shared, params["wb"], params["bb"])
    return normed * (1.0 + gamma) + beta


if __name__ == "__main__":
    key = jax.random.PRNGKey(0)
    kx_, ki, k1, k2, k3, k4, k5, k6 = jax.random.split(key, 8)

    # Module config: Spade(nc=4, nc_in=4, norm='batch'), hidden=128, k=3
    N, nc, nc_in = 2, 4, 4
    H, W = 16, 16
    Hin, Win = 8, 8
    hidden = 128

    x = jax.random.normal(kx_, (N, nc, H, W), jnp.float32)
    seg = jax.random.normal(ki, (N, nc_in, Hin, Win), jnp.float32)

    params = {
        "ws": 0.10 * jax.random.normal(k1, (3, 3, nc_in, hidden), jnp.float32),
        "bs": 0.10 * jax.random.normal(k2, (hidden,), jnp.float32),
        "wg": 0.05 * jax.random.normal(k3, (3, 3, hidden, nc), jnp.float32),
        "bg": 0.05 * jax.random.normal(k4, (nc,), jnp.float32),
        "wb": 0.05 * jax.random.normal(k5, (3, 3, hidden, nc), jnp.float32),
        "bb": 0.05 * jax.random.normal(k6, (nc,), jnp.float32),
    }

    out = jax.block_until_ready(spade_forward(x, seg, params))
    ref = jax.block_until_ready(spade_reference(x, seg, params))

    assert out.shape == (N, nc, H, W)
    assert bool(jnp.all(jnp.isfinite(out)))
    max_diff = float(jnp.max(jnp.abs(out - ref)))
    # bf16 MXU operands with f32 accumulation: expected error O(1e-2); the
    # roll+mask path keeps the gamma/beta spatial shift exact in f32.
    assert max_diff < 7.5e-2, f"max_diff={max_diff}"
    print("KERNEL_OK")
</pallas_src>

<mosaic_0001>
module attributes {stable_mosaic.version = 11 : i64} {
  func.func @kernel(%arg0: i32, %arg1: memref<4x512xf32, #tpu.memory_space<vmem>>, %arg2: memref<16x1xf32, #tpu.memory_space<vmem>>, %arg3: memref<40x512xbf16, #tpu.memory_space<vmem>>, %arg4: memref<128x40xbf16, #tpu.memory_space<vmem>>, %arg5: memref<72x128xbf16, #tpu.memory_space<vmem>>, %arg6: memref<72x512xf32, #tpu.memory_space<vmem>>, %arg7: memref<4x512xf32, #tpu.memory_space<vmem>>) attributes {dimension_semantics = [#tpu.dimension_semantics<arbitrary>], iteration_bounds = array<i64: 1>, scalar_prefetch = 0 : i64, scratch_operands = 0 : i64, tpu.core_type = #tpu.core_type<tc>, window_params = [{pipeline_mode = #tpu.pipeline_mode<synchronous>, transform_indices = @transform_0, window_bounds = array<i64: 4, 512>}, {pipeline_mode = #tpu.pipeline_mode<synchronous>, transform_indices = @transform_1, window_bounds = array<i64: 16, 1>}, {pipeline_mode = #tpu.pipeline_mode<synchronous>, transform_indices = @transform_2, window_bounds = array<i64: 40, 512>}, {pipeline_mode = #tpu.pipeline_mode<synchronous>, transform_indices = @transform_3, window_bounds = array<i64: 128, 40>}, {pipeline_mode = #tpu.pipeline_mode<synchronous>, transform_indices = @transform_4, window_bounds = array<i64: 72, 128>}, {pipeline_mode = #tpu.pipeline_mode<synchronous>, transform_indices = @transform_5, window_bounds = array<i64: 72, 512>}, {pipeline_mode = #tpu.pipeline_mode<synchronous>, transform_indices = @transform_6, window_bounds = array<i64: 4, 512>}]} {
    %c0 = arith.constant 0 : index
    %c0_0 = arith.constant 0 : index
    %0 = vector.load %arg2[%c0, %c0_0] : memref<16x1xf32, #tpu.memory_space<vmem>>, vector<16x1xf32>
    %1 = vector.extract_strided_slice %0 {offsets = [0, 0], sizes = [4, 1], strides = [1, 1]} : vector<16x1xf32> to vector<4x1xf32>
    %2 = vector.extract_strided_slice %0 {offsets = [4, 0], sizes = [4, 1], strides = [1, 1]} : vector<16x1xf32> to vector<4x1xf32>
    %3 = vector.extract_strided_slice %0 {offsets = [8, 0], sizes = [8, 1], strides = [1, 1]} : vector<16x1xf32> to vector<8x1xf32>
    %c0_1 = arith.constant 0 : index
    %c0_2 = arith.constant 0 : index
    %4 = vector.load %arg1[%c0_1, %c0_2] : memref<4x512xf32, #tpu.memory_space<vmem>>, vector<4x512xf32>
    %5 = vector.broadcast %1 : vector<4x1xf32> to vector<4x512xf32>
    %6 = arith.mulf %4, %5 : vector<4x512xf32>
    %7 = vector.broadcast %2 : vector<4x1xf32> to vector<4x512xf32>
    %8 = arith.addf %6, %7 : vector<4x512xf32>
    %c0_3 = arith.constant 0 : index
    %c0_4 = arith.constant 0 : index
    %9 = vector.load %arg4[%c0_3, %c0_4] : memref<128x40xbf16, #tpu.memory_space<vmem>>, vector<128x40xbf16>
    %c0_5 = arith.constant 0 : index
    %c0_6 = arith.constant 0 : index
    %10 = vector.load %arg3[%c0_5, %c0_6] : memref<40x512xbf16, #tpu.memory_space<vmem>>, vector<40x512xbf16>
    %cst = arith.constant dense<0.000000e+00> : vector<128x512xf32>
    %11 = tpu.matmul %9, %10, %cst {dimension_numbers = #tpu.dot_dimension_numbers<[1], [0], [0], [1], [0, 0, 1, 1], [], []>} : vector<128x40xbf16>, vector<40x512xbf16>, vector<128x512xf32> -> vector<128x512xf32>
    %cst_7 = arith.constant 0.000000e+00 : f32
    %12 = vector.broadcast %cst_7 : f32 to vector<128x512xf32>
    %13 = arith.maximumf %11, %12 : vector<128x512xf32>
    %14 = arith.truncf %13 : vector<128x512xf32> to vector<128x512xbf16>
    %c0_8 = arith.constant 0 : index
    %c0_9 = arith.constant 0 : index
    %15 = vector.load %arg5[%c0_8, %c0_9] : memref<72x128xbf16, #tpu.memory_space<vmem>>, vector<72x128xbf16>
    %cst_10 = arith.constant dense<0.000000e+00> : vector<72x512xf32>
    %16 = tpu.matmul %15, %14, %cst_10 {dimension_numbers = #tpu.dot_dimension_numbers<[1], [0], [0], [1], [0, 0, 1, 1], [], []>} : vector<72x128xbf16>, vector<128x512xbf16>, vector<72x512xf32> -> vector<72x512xf32>
    %c0_11 = arith.constant 0 : index
    %c0_12 = arith.constant 0 : index
    %17 = vector.load %arg6[%c0_11, %c0_12] : memref<72x512xf32, #tpu.memory_space<vmem>>, vector<72x512xf32>
    %18 = vector.shape_cast %3 : vector<8x1xf32> to vector<8x1xf32>
    %19 = vector.broadcast %18 : vector<8x1xf32> to vector<8x512xf32>
    %20 = vector.extract_strided_slice %16 {offsets = [0, 0], sizes = [8, 512], strides = [1, 1]} : vector<72x512xf32> to vector<8x512xf32>
    %c17_i32 = arith.constant 17 : i32
    %21 = tpu.dynamic_rotate %20 by %c17_i32 dim 1 : vector<8x512xf32>, i32 -> vector<8x512xf32>
    %22 = vector.extract_strided_slice %17 {offsets = [0, 0], sizes = [8, 512], strides = [1, 1]} : vector<72x512xf32> to vector<8x512xf32>
    %23 = arith.mulf %21, %22 : vector<8x512xf32>
    %24 = arith.addf %19, %23 : vector<8x512xf32>
    %25 = vector.extract_strided_slice %16 {offsets = [8, 0], sizes = [8, 512], strides = [1, 1]} : vector<72x512xf32> to vector<8x512xf32>
    %c16_i32 = arith.constant 16 : i32
    %26 = tpu.dynamic_rotate %25 by %c16_i32 dim 1 : vector<8x512xf32>, i32 -> vector<8x512xf32>
    %27 = vector.extract_strided_slice %17 {offsets = [8, 0], sizes = [8, 512], strides = [1, 1]} : vector<72x512xf32> to vector<8x512xf32>
    %28 = arith.mulf %26, %27 : vector<8x512xf32>
    %29 = arith.addf %24, %28 : vector<8x512xf32>
    %30 = vector.extract_strided_slice %16 {offsets = [16, 0], sizes = [8, 512], strides = [1, 1]} : vector<72x512xf32> to vector<8x512xf32>
    %c15_i32 = arith.constant 15 : i32
    %31 = tpu.dynamic_rotate %30 by %c15_i32 dim 1 : vector<8x512xf32>, i32 -> vector<8x512xf32>
    %32 = vector.extract_strided_slice %17 {offsets = [16, 0], sizes = [8, 512], strides = [1, 1]} : vector<72x512xf32> to vector<8x512xf32>
    %33 = arith.mulf %31, %32 : vector<8x512xf32>
    %34 = arith.addf %29, %33 : vector<8x512xf32>
    %35 = vector.extract_strided_slice %16 {offsets = [24, 0], sizes = [8, 512], strides = [1, 1]} : vector<72x512xf32> to vector<8x512xf32>
    %c1_i32 = arith.constant 1 : i32
    %36 = tpu.dynamic_rotate %35 by %c1_i32 dim 1 : vector<8x512xf32>, i32 -> vector<8x512xf32>
    %37 = vector.extract_strided_slice %17 {offsets = [24, 0], sizes = [8, 512], strides = [1, 1]} : vector<72x512xf32> to vector<8x512xf32>
    %38 = arith.mulf %36, %37 : vector<8x512xf32>
    %39 = arith.addf %34, %38 : vector<8x512xf32>
    %40 = vector.extract_strided_slice %16 {offsets = [32, 0], sizes = [8, 512], strides = [1, 1]} : vector<72x512xf32> to vector<8x512xf32>
    %41 = arith.addf %39, %40 : vector<8x512xf32>
    %42 = vector.extract_strided_slice %16 {offsets = [40, 0], sizes = [8, 512], strides = [1, 1]} : vector<72x512xf32> to vector<8x512xf32>
    %c511_i32 = arith.constant 511 : i32
    %43 = tpu.dynamic_rotate %42 by %c511_i32 dim 1 : vector<8x512xf32>, i32 -> vector<8x512xf32>
    %44 = vector.extract_strided_slice %17 {offsets = [40, 0], sizes = [8, 512], strides = [1, 1]} : vector<72x512xf32> to vector<8x512xf32>
    %45 = arith.mulf %43, %44 : vector<8x512xf32>
    %46 = arith.addf %41, %45 : vector<8x512xf32>
    %47 = vector.extract_strided_slice %16 {offsets = [48, 0], sizes = [8, 512], strides = [1, 1]} : vector<72x512xf32> to vector<8x512xf32>
    %c497_i32 = arith.constant 497 : i32
    %48 = tpu.dynamic_rotate %47 by %c497_i32 dim 1 : vector<8x512xf32>, i32 -> vector<8x512xf32>
    %49 = vector.extract_strided_slice %17 {offsets = [48, 0], sizes = [8, 512], strides = [1, 1]} : vector<72x512xf32> to vector<8x512xf32>
    %50 = arith.mulf %48, %49 : vector<8x512xf32>
    %51 = arith.addf %46, %50 : vector<8x512xf32>
    %52 = vector.extract_strided_slice %16 {offsets = [56, 0], sizes = [8, 512], strides = [1, 1]} : vector<72x512xf32> to vector<8x512xf32>
    %c496_i32 = arith.constant 496 : i32
    %53 = tpu.dynamic_rotate %52 by %c496_i32 dim 1 : vector<8x512xf32>, i32 -> vector<8x512xf32>
    %54 = vector.extract_strided_slice %17 {offsets = [56, 0], sizes = [8, 512], strides = [1, 1]} : vector<72x512xf32> to vector<8x512xf32>
    %55 = arith.mulf %53, %54 : vector<8x512xf32>
    %56 = arith.addf %51, %55 : vector<8x512xf32>
    %57 = vector.extract_strided_slice %16 {offsets = [64, 0], sizes = [8, 512], strides = [1, 1]} : vector<72x512xf32> to vector<8x512xf32>
    %c495_i32 = arith.constant 495 : i32
    %58 = tpu.dynamic_rotate %57 by %c495_i32 dim 1 : vector<8x512xf32>, i32 -> vector<8x512xf32>
    %59 = vector.extract_strided_slice %17 {offsets = [64, 0], sizes = [8, 512], strides = [1, 1]} : vector<72x512xf32> to vector<8x512xf32>
    %60 = arith.mulf %58, %59 : vector<8x512xf32>
    %61 = arith.addf %56, %60 : vector<8x512xf32>
    %62 = vector.extract_strided_slice %61 {offsets = [0, 0], sizes = [4, 512], strides = [1, 1]} : vector<8x512xf32> to vector<4x512xf32>
    %cst_13 = arith.constant 1.000000e+00 : f32
    %63 = vector.broadcast %cst_13 : f32 to vector<4x512xf32>
    %64 = arith.addf %63, %62 : vector<4x512xf32>
    %65 = arith.mulf %8, %64 : vector<4x512xf32>
    %66 = vector.extract_strided_slice %61 {offsets = [4, 0], sizes = [4, 512], strides = [1, 1]} : vector<8x512xf32> to vector<4x512xf32>
    %67 = arith.addf %65, %66 : vector<4x512xf32>
    %c0_14 = arith.constant 0 : index
    %c0_15 = arith.constant 0 : index
    %68 = vector.load %arg7[%c0_14, %c0_15] : memref<4x512xf32, #tpu.memory_space<vmem>>, vector<4x512xf32>
    tpu.vector_store %arg7[%c0_14, %c0_15], %67 {strides = array<i32>} : memref<4x512xf32, #tpu.memory_space<vmem>>, vector<4x512xf32>,
    return
  }
  func.func @transform_0(%arg0: i32) -> (i32, i32) {
    %c0_i32 = arith.constant 0 : i32
    %c0_i32_0 = arith.constant 0 : i32
    %c0_i32_1 = arith.constant 0 : i32
    return %c0_i32, %c0_i32_0 : i32, i32
  }
  func.func @transform_1(%arg0: i32) -> (i32, i32) {
    %c0_i32 = arith.constant 0 : i32
    %c0_i32_0 = arith.constant 0 : i32
    %c0_i32_1 = arith.constant 0 : i32
    return %c0_i32, %c0_i32_0 : i32, i32
  }
  func.func @transform_2(%arg0: i32) -> (i32, i32) {
    %c0_i32 = arith.constant 0 : i32
    %c0_i32_0 = arith.constant 0 : i32
    %c0_i32_1 = arith.constant 0 : i32
    return %c0_i32, %c0_i32_0 : i32, i32
  }
  func.func @transform_3(%arg0: i32) -> (i32, i32) {
    %c0_i32 = arith.constant 0 : i32
    %c0_i32_0 = arith.constant 0 : i32
    %c0_i32_1 = arith.constant 0 : i32
    return %c0_i32, %c0_i32_0 : i32, i32
  }
  func.func @transform_4(%arg0: i32) -> (i32, i32) {
    %c0_i32 = arith.constant 0 : i32
    %c0_i32_0 = arith.constant 0 : i32
    %c0_i32_1 = arith.constant 0 : i32
    return %c0_i32, %c0_i32_0 : i32, i32
  }
  func.func @transform_5(%arg0: i32) -> (i32, i32) {
    %c0_i32 = arith.constant 0 : i32
    %c0_i32_0 = arith.constant 0 : i32
    %c0_i32_1 = arith.constant 0 : i32
    return %c0_i32, %c0_i32_0 : i32, i32
  }
  func.func @transform_6(%arg0: i32) -> (i32, i32) {
    %c0_i32 = arith.constant 0 : i32
    %c0_i32_0 = arith.constant 0 : i32
    %c0_i32_1 = arith.constant 0 : i32
    return %c0_i32, %c0_i32_0 : i32, i32
  }
}

</mosaic_0001>

<bundles_post_ra>
// kernel: spade_forward.1
= control target key start
LH: loop header
LB: loop body
LE: loop exit
PB: predicated region body
PF: predicated region fallthrough
CT: control target
= control target key end

     0   :  { %vm193_vm0 = vcmask 1043456   ;;  %v1579_v2 = vmov 0   ;;  %vm168_vm1 = vcmask 326656   ;;  %s1054_s20 = smov 17   ;;  %s1057_s21 = smov 1   ;;  %s1572_s2 = inlined_call_operand.vmem [shape: bf16[40,512], index: 2, kind: input, shape index: {}]   ;;  %s1573_s3 = inlined_call_operand.vmem [shape: bf16[128,40], index: 3, kind: input, shape index: {}]   ;;  %s1574_s4 = inlined_call_operand.vmem [shape: bf16[72,128], index: 4, kind: input, shape index: {}]   ;;  %s1575_s1 = inlined_call_operand.vmem [shape: f32[16,1], index: 1, kind: input, shape index: {}]   ;;  %s1576_s5 = inlined_call_operand.vmem [shape: f32[72,512], index: 5, kind: input, shape index: {}]   ;;  %s1577_s0 = inlined_call_operand.vmem [shape: f32[4,512], index: 0, kind: input, shape index: {}]   ;;  %s1578_s6 = inlined_call_operand.vmem [shape: f32[4,512], index: 6, kind: output, shape index: {}]  }
   0x1   :  { %v76_v0 = vld [vmem:[%s1572_s2 + $0x40] sm:$0xff]  ;;  %v77_v1 = vld [vmem:[%s1572_s2 + $0x48] sm:$0xff]  ;;  %238 = vmatprep.mubr.bf16.mxu0 %v1579_v2  ;;  %351 = vmatprep.mubr.bf16.mxu1 %v1579_v2  ;;  %v1042_v19 = vld [vmem:[%s1573_s3 + $0x10] sm:$0xff]   ;;  %s1058_s22 = smov 127   ;;  %s1059_s23 = smov 113  }
   0x2   :  { %v985_v3 = vcombine.high %v76_v0, %v76_v0  ;;  %v987_v4 = vcombine.high %v77_v1, %v77_v1  ;;  %v984_v5 = vcombine.low %v76_v0, %v76_v0  ;;  %v986_v6 = vcombine.low %v77_v1, %v77_v1  ;;  %v1028_v7 = vld [vmem:[%s1572_s2 + $0x24] ss:$16 sps:$4 sm:$0xff]   ;;  %1023 = vset.pattern.permute.xlu1 %v1579_v2  ;;  %v1030_v8 = vld [vmem:[%s1572_s2 + $0x2c] ss:$16 sps:$4 sm:$0xff]   ;;  %v1032_v11 = vld [vmem:[%s1572_s2 + $0x20] ss:$16 sps:$4 sm:$0xff]  }
   0x3   :  { %1022 = vset.pattern.permute.xlu0 %v1579_v2  ;;  %v1033_v12 = vld [vmem:[%s1572_s2 + $0x28] ss:$16 sps:$4 sm:$0xff]   ;;  %v1034_v13 = vld [vmem:[%s1572_s2 + $0x4] ss:$16 sps:$4 sm:$0xff]   ;;  %v1036_v14 = vld [vmem:[%s1572_s2 + $0xc] ss:$16 sps:$4 sm:$0xff]  }
   0x4   :  { %988 = vmatprep.subr.msk.bf16.mxu0 %vm193_vm0, %v985_v3  ;;  %997 = vmatprep.subr.msk.bf16.mxu1 %vm193_vm0, %v987_v4  ;;  %v195_v9 = vsel %vm193_vm0, %v984_v5, 0  ;;  %v201_v10 = vsel %vm193_vm0, %v986_v6, 0  ;;  %v1038_v15 = vld [vmem:[%s1572_s2] ss:$16 sps:$4 sm:$0xff]   ;;  %v1039_v16 = vld [vmem:[%s1572_s2 + $0x8] ss:$16 sps:$4 sm:$0xff]  }
   0x5   :  { %217 = vmatpush1.bf16.msra.mxu0 %v195_v9  ;;  %330 = vmatpush1.bf16.msra.mxu1 %v201_v10  ;;  %v1040_v17 = vld [vmem:[%s1573_s3] sm:$0xff]   ;;  %v1041_v18 = vld [vmem:[%s1573_s3 + $0x8] sm:$0xff]   ;;  %v1043_v20 = vld [vmem:[%s1573_s3 + $0x18] sm:$0xff]   ;;  %s1055_s2 = smov 16   ;;  %s1060_s24 = smov 112  }
   0x6   :  { %218 = vmatprep.subr.bf16.mxu0 %v1028_v7  ;;  %331 = vmatprep.subr.bf16.mxu1 %v1030_v8  ;;  %v1044_v21 = vld [vmem:[%s1573_s3 + $0x20] sm:$0xff]   ;;  %v1045_v22 = vld [vmem:[%s1573_s3 + $0x28] sm:$0xff]   ;;  %v1046_v23 = vld [vmem:[%s1573_s3 + $0x30] sm:$0xff]   ;;  %s1061_s25 = smov 111  }
   0x7   :  { %v1047_v24 = vld [vmem:[%s1573_s3 + $0x38] sm:$0xff]   ;;  %v25_v31 = vld [vmem:[%s1575_s1 + $0x8] sm:$0xff]  ;;  %v24_v32 = vld [vmem:[%s1575_s1] sm:$0xff] }
   0x8   :  { %761 = vperm.xlu0 %1022, %v25_v31   ;;  %30 = vperm.xlu1 %1023, %v24_v32  }
   0x9   :  { %219 = vmatpush1.bf16.msra.mxu0 %v1032_v11  ;;  %332 = vmatpush1.bf16.msra.mxu1 %v1033_v12 }
   0xa   :  { %220 = vmatprep.subr.bf16.mxu0 %v1034_v13  ;;  %333 = vmatprep.subr.bf16.mxu1 %v1036_v14 }
   0xd   :  { %221 = vmatpush1.bf16.msra.mxu0 %v1038_v15  ;;  %334 = vmatpush1.bf16.msra.mxu1 %v1039_v16 }
  0x10   :  { %989 = vmatmul.mubr.msk.bf16.vlgmr.msra.gmra.mxu0 %vm168_vm1, %v1040_v17  ;;  %998 = vmatmul.mubr.msk.bf16.vlgmr.msra.gmra.mxu1 %vm168_vm1, %v1040_v17 }
  0x11   :  { %248 = vmatprep.mubr.bf16.mxu0 %v1579_v2  ;;  %361 = vmatprep.mubr.bf16.mxu1 %v1579_v2 }
  0x18   :  { %990 = vmatmul.mubr.msk.bf16.gmra.mxu0 %vm168_vm1, %v1041_v18  ;;  %999 = vmatmul.mubr.msk.bf16.gmra.mxu1 %vm168_vm1, %v1041_v18 }
  0x19   :  { %258 = vmatprep.mubr.bf16.mxu0 %v1579_v2  ;;  %371 = vmatprep.mubr.bf16.mxu1 %v1579_v2 }
  0x20   :  { %991 = vmatmul.mubr.msk.bf16.gmra.mxu0 %vm168_vm1, %v1042_v19  ;;  %1000 = vmatmul.mubr.msk.bf16.gmra.mxu1 %vm168_vm1, %v1042_v19 }
  0x21   :  { %268 = vmatprep.mubr.bf16.mxu0 %v1579_v2  ;;  %381 = vmatprep.mubr.bf16.mxu1 %v1579_v2 }
  0x28   :  { %992 = vmatmul.mubr.msk.bf16.gmra.mxu0 %vm168_vm1, %v1043_v20  ;;  %1001 = vmatmul.mubr.msk.bf16.gmra.mxu1 %vm168_vm1, %v1043_v20 }
  0x29   :  { %278 = vmatprep.mubr.bf16.mxu0 %v1579_v2  ;;  %391 = vmatprep.mubr.bf16.mxu1 %v1579_v2 }
  0x30   :  { %993 = vmatmul.mubr.msk.bf16.gmra.mxu0 %vm168_vm1, %v1044_v21  ;;  %1002 = vmatmul.mubr.msk.bf16.gmra.mxu1 %vm168_vm1, %v1044_v21 }
  0x31   :  { %288 = vmatprep.mubr.bf16.mxu0 %v1579_v2  ;;  %401 = vmatprep.mubr.bf16.mxu1 %v1579_v2 }
  0x38   :  { %994 = vmatmul.mubr.msk.bf16.gmra.mxu0 %vm168_vm1, %v1045_v22  ;;  %1003 = vmatmul.mubr.msk.bf16.gmra.mxu1 %vm168_vm1, %v1045_v22 }
  0x39   :  { %298 = vmatprep.mubr.bf16.mxu0 %v1579_v2  ;;  %411 = vmatprep.mubr.bf16.mxu1 %v1579_v2 }
  0x40   :  { %995 = vmatmul.mubr.msk.bf16.gmra.mxu0 %vm168_vm1, %v1046_v23  ;;  %1004 = vmatmul.mubr.msk.bf16.gmra.mxu1 %vm168_vm1, %v1046_v23 }
  0x41   :  { %308 = vmatprep.mubr.bf16.mxu0 %v1579_v2  ;;  %421 = vmatprep.mubr.bf16.mxu1 %v1579_v2 }
  0x48   :  { %996 = vmatmul.mubr.msk.bf16.gmra.mxu0 %vm168_vm1, %v1047_v24  ;;  %1005 = vmatmul.mubr.msk.bf16.gmra.mxu1 %vm168_vm1, %v1047_v24 }
  0x49   :  { %597 = vmatprep.mubr.bf16.mxu0 %v1579_v2  ;;  %678 = vmatprep.mubr.bf16.mxu1 %v1579_v2 }
  0xd0   :  { %v240_v25 = vpop.f32.mrf.mxu0  ;;  %v353_v26 = vpop.f32.mrf.mxu1 }
  0xd1   :  { %v432_v33 = vmax.f32 %v240_v25, 0.0  ;;  %v434_v34 = vmax.f32 %v353_v26, 0.0 }
  0xd2   :  { %v242_v27 = vpop.f32.mrf.mxu0  ;;  %v355_v28 = vpop.f32.mrf.mxu1 }
  0xd3   :  { %v433_v37 = vmax.f32 %v242_v27, 0.0  ;;  %v435_v38 = vmax.f32 %v355_v28, 0.0 }
  0xd4   :  { %v244_v29 = vpop.f32.mrf.mxu0  ;;  %v357_v30 = vpop.f32.mrf.mxu1 }
  0xd5   :  { %v436_v35 = vmax.f32 %v244_v29, 0.0  ;;  %v438_v36 = vmax.f32 %v357_v30, 0.0 }
  0xd6   :  { %v246_v39 = vpop.f32.mrf.mxu0  ;;  %v359_v40 = vpop.f32.mrf.mxu1 }
  0xd7   :  { %v1199_v41 = vpack.c.bf16 %v436_v35, %v432_v33  ;;  %v1201_v42 = vpack.c.bf16 %v438_v36, %v434_v34  ;;  %v437_v43 = vmax.f32 %v246_v39, 0.0  ;;  %v439_v44 = vmax.f32 %v359_v40, 0.0 }
  0xd8   :  { %v250_v45 = vpop.f32.mrf.mxu0  ;;  %v363_v46 = vpop.f32.mrf.mxu1 }
  0xd9   :  { %1581 = vst [vmem:[#allocation2_spill] sm:$0xff] %v1199_v41  ;;  %1582 = vst [vmem:[#allocation3_spill] sm:$0xff] %v1201_v42  ;;  %v1203_v47 = vpack.c.bf16 %v437_v43, %v433_v37  ;;  %v1205_v48 = vpack.c.bf16 %v439_v44, %v435_v38  ;;  %v440_v53 = vmax.f32 %v250_v45, 0.0  ;;  %v442_v54 = vmax.f32 %v363_v46, 0.0 }
  0xda   :  { %v252_v49 = vpop.f32.mrf.mxu0  ;;  %v365_v50 = vpop.f32.mrf.mxu1 }
  0xdb   :  { %1583 = vst [vmem:[#allocation4_spill] sm:$0xff] %v1203_v47  ;;  %1584 = vst [vmem:[#allocation5_spill] sm:$0xff] %v1205_v48  ;;  %v441_v57 = vmax.f32 %v252_v49, 0.0  ;;  %v443_v58 = vmax.f32 %v365_v50, 0.0 }
  0xdc   :  { %v254_v51 = vpop.f32.mrf.mxu0  ;;  %v367_v52 = vpop.f32.mrf.mxu1 }
  0xdd   :  { %v444_v55 = vmax.f32 %v254_v51, 0.0  ;;  %v446_v56 = vmax.f32 %v367_v52, 0.0 }
  0xde   :  { %v256_v59 = vpop.f32.mrf.mxu0  ;;  %v369_v60 = vpop.f32.mrf.mxu1 }
  0xdf   :  { %v1207_v61 = vpack.c.bf16 %v444_v55, %v440_v53  ;;  %v1209_v62 = vpack.c.bf16 %v446_v56, %v442_v54  ;;  %v445_v63 = vmax.f32 %v256_v59, 0.0  ;;  %v447_v0 = vmax.f32 %v369_v60, 0.0 }
  0xe0   :  { %v1211_v1 = vpop.f32.mrf.mxu0  ;;  %v1213_v3 = vpop.f32.mrf.mxu1 }
  0xe1   :  { %1585 = vst [vmem:[#allocation6_spill] sm:$0xff] %v1207_v61  ;;  %1586 = vst [vmem:[#allocation7_spill] sm:$0xff] %v1209_v62  ;;  %v1215_v4 = vpack.c.bf16 %v445_v63, %v441_v57  ;;  %v1217_v5 = vpack.c.bf16 %v447_v0, %v443_v58 }
  0xe2   :  { %1587 = vst [vmem:[#allocation8_spill] sm:$0xff] %v1211_v1  ;;  %1588 = vst [vmem:[#allocation9_spill] sm:$0xff] %v1213_v3  ;;  %v1219_v6 = vpop.f32.mrf.mxu0  ;;  %v1221_v7 = vpop.f32.mrf.mxu1 }
  0xe3   :  { %1589 = vst [vmem:[#allocation10_spill] sm:$0xff] %v1215_v4  ;;  %1590 = vst [vmem:[#allocation11_spill] sm:$0xff] %v1217_v5 }
  0xe4   :  { %v1223_v8 = vpop.f32.mrf.mxu0  ;;  %v1225_v9 = vpop.f32.mrf.mxu1 }
  0xe6   :  { %v1227_v10 = vpop.f32.mrf.mxu0  ;;  %v1229_v11 = vpop.f32.mrf.mxu1 }
  0xe8   :  { %v1231_v12 = vpop.f32.mrf.mxu0  ;;  %v1233_v13 = vpop.f32.mrf.mxu1 }
  0xea   :  { %v1235_v14 = vpop.f32.mrf.mxu0  ;;  %v1237_v15 = vpop.f32.mrf.mxu1 }
  0xec   :  { %v1239_v16 = vpop.f32.mrf.mxu0  ;;  %v1241_v17 = vpop.f32.mrf.mxu1 }
  0xee   :  { %v1243_v18 = vpop.f32.mrf.mxu0  ;;  %v1245_v19 = vpop.f32.mrf.mxu1 }
  0xf0   :  { %v1247_v20 = vpop.f32.mrf.mxu0  ;;  %v1249_v21 = vpop.f32.mrf.mxu1 }
  0xf2   :  { %v1251_v22 = vpop.f32.mrf.mxu0  ;;  %v1253_v23 = vpop.f32.mrf.mxu1 }
  0xf4   :  { %v1255_v24 = vpop.f32.mrf.mxu0  ;;  %v1257_v25 = vpop.f32.mrf.mxu1 }
  0xf6   :  { %v1259_v26 = vpop.f32.mrf.mxu0  ;;  %v1261_v27 = vpop.f32.mrf.mxu1 }
  0xf8   :  { %v1263_v28 = vpop.f32.mrf.mxu0  ;;  %v1265_v29 = vpop.f32.mrf.mxu1 }
  0xfa   :  { %v292_v30 = vpop.f32.mrf.mxu0  ;;  %v405_v31 = vpop.f32.mrf.mxu1 }
  0xfc   :  { %v1267_v32 = vpop.f32.mrf.mxu0  ;;  %v1269_v33 = vpop.f32.mrf.mxu1 }
  0xfe   :  { %v296_v34 = vpop.f32.mrf.mxu0  ;;  %v409_v35 = vpop.f32.mrf.mxu1 }
 0x100   :  { %v300_v36 = vpop.f32.mrf.mxu0  ;;  %v413_v37 = vpop.f32.mrf.mxu1 }
 0x102   :  { %v302_v38 = vpop.f32.mrf.mxu0  ;;  %v415_v39 = vpop.f32.mrf.mxu1 }
 0x103   :  { %v481_v48 = vmax.f32 %v302_v38, 0.0  ;;  %v483_v47 = vmax.f32 %v415_v39, 0.0  ;;  %v478_v38 = vmax.f32 %v1269_v33, 0.0  ;;  %v464_v33 = vmax.f32 %v1247_v20, 0.0 }
 0x104   :  { %v304_v40 = vpop.f32.mrf.mxu0  ;;  %v417_v43 = vpop.f32.mrf.mxu1  ;;  %v455_v20 = vmax.f32 %v1229_v11, 0.0  ;;  %v456_v39 = vmax.f32 %v1231_v12, 0.0 }
 0x105   :  { %v484_v5 = vmax.f32 %v304_v40, 0.0  ;;  %v486_v4 = vmax.f32 %v417_v43, 0.0 }
 0x106   :  { %v306_v44 = vpop.f32.mrf.mxu0  ;;  %v419_v45 = vpop.f32.mrf.mxu1 }
 0x107   :  { %v485_v54 = vmax.f32 %v306_v44, 0.0  ;;  %v487_v55 = vmax.f32 %v419_v45, 0.0  ;;  %v477_v44 = vmax.f32 %v296_v34, 0.0  ;;  %v479_v45 = vmax.f32 %v409_v35, 0.0 }
 0x108   :  { %v310_v46 = vpop.f32.mrf.mxu0  ;;  %v423_v49 = vpop.f32.mrf.mxu1  ;;  %v469_v34 = vmax.f32 %v1259_v26, 0.0 }
 0x109   :  { %v488_v42 = vmax.f32 %v310_v46, 0.0  ;;  %v490_v41 = vmax.f32 %v423_v49, 0.0  ;;  %v473_v46 = vmax.f32 %v292_v30, 0.0  ;;  %v475_v49 = vmax.f32 %v405_v31, 0.0 }
 0x10a   :  { %v312_v50 = vpop.f32.mrf.mxu0  ;;  %v425_v51 = vpop.f32.mrf.mxu1  ;;  %v467_v30 = vmax.f32 %v1253_v23, 0.0  ;;  %v461_v31 = vmax.f32 %v1243_v18, 0.0  ;;  %v457_v23 = vmax.f32 %v1235_v14, 0.0  ;;  %v462_v18 = vmax.f32 %v1241_v17, 0.0 }
 0x10b   :  { %v489_v60 = vmax.f32 %v312_v50, 0.0  ;;  %v491_v63 = vmax.f32 %v425_v51, 0.0  ;;  %v480_v50 = vmax.f32 %v300_v36, 0.0  ;;  %v482_v51 = vmax.f32 %v413_v37, 0.0 }
 0x10c   :  { %v314_v52 = vpop.f32.mrf.mxu0  ;;  %v427_v53 = vpop.f32.mrf.mxu1  ;;  %v453_v36 = vmax.f32 %v1227_v10, 0.0  ;;  %v509_v37 = vpack.c.bf16 %v461_v31, %v457_v23  ;;  %v458_v14 = vmax.f32 %v1233_v13, 0.0  ;;  %v452_v17 = vmax.f32 %v1223_v8, 0.0  ;;  %v1594_v8 = vld [vmem:[#allocation11_spill] sm:$0xff] }
 0x10d   :  { %v492_v56 = vmax.f32 %v314_v52, 0.0  ;;  %v494_v57 = vmax.f32 %v427_v53, 0.0  ;;  %v521_v52 = vpack.c.bf16 %v485_v54, %v481_v48  ;;  %v523_v53 = vpack.c.bf16 %v487_v55, %v483_v47  ;;  %v1591_v55 = vld [vmem:[#allocation8_spill] sm:$0xff] }
 0x10e   :  { %v316_v58 = vpop.f32.mrf.mxu0  ;;  %v429_v59 = vpop.f32.mrf.mxu1  ;;  %v471_v47 = vmax.f32 %v1261_v27, 0.0  ;;  %v517_v48 = vpack.c.bf16 %v477_v44, %v473_v46  ;;  %v454_v10 = vmax.f32 %v1225_v9, 0.0  ;;  %v510_v11 = vpack.c.bf16 %v462_v18, %v458_v14  ;;  %v1595_v9 = vld [vmem:[#allocation6_spill] sm:$0xff]  ;;  %v1600_v44 = vld [vmem:[#allocation3_spill] sm:$0xff] }
 0x10f   :  { %v493_v0 = vmax.f32 %v316_v58, 0.0  ;;  %v495_v2 = vmax.f32 %v429_v59, 0.0  ;;  %v524_v3 = vpack.c.bf16 %v492_v56, %v488_v42  ;;  %v526_v1 = vpack.c.bf16 %v494_v57, %v490_v41  ;;  %v1592_v56 = vld [vmem:[#allocation9_spill] sm:$0xff]  ;;  %v1593_v57 = vld [vmem:[#allocation10_spill] sm:$0xff]  ;;  %v1596_v58 = vld [vmem:[#allocation7_spill] sm:$0xff] }
 0x110   :  { %v520_v42 = vpack.c.bf16 %v484_v5, %v480_v50  ;;  %v522_v41 = vpack.c.bf16 %v486_v4, %v482_v51  ;;  %v468_v4 = vmax.f32 %v1255_v24, 0.0  ;;  %v470_v5 = vmax.f32 %v1257_v25, 0.0  ;;  %v1597_v59 = vld [vmem:[#allocation4_spill] sm:$0xff]  ;;  %v1051_v50 = vld [vmem:[%s1574_s4 + $0x18] sm:$0xff]   ;;  %v1052_v51 = vld [vmem:[%s1574_s4 + $0x20] ss:$0 sps:$4 sm:$0xff]  }
 0x111   :  { %v525_v62 = vpack.c.bf16 %v493_v0, %v489_v60  ;;  %v527_v61 = vpack.c.bf16 %v495_v2, %v491_v63  ;;  %v476_v2 = vmax.f32 %v1267_v32, 0.0  ;;  %v459_v24 = vmax.f32 %v1237_v15, 0.0  ;;  %v1598_v60 = vld [vmem:[#allocation5_spill] sm:$0xff]  ;;  %v1048_v63 = vld [vmem:[%s1574_s4] sm:$0xff]  }
 0x112   :  { %v460_v25 = vmax.f32 %v1239_v16, 0.0  ;;  %v512_v35 = vpack.c.bf16 %v468_v4, %v464_v33  ;;  %v449_v15 = vmax.f32 %v1219_v6, 0.0  ;;  %v451_v16 = vmax.f32 %v1221_v7, 0.0  ;;  %v1599_v0 = vld [vmem:[#allocation2_spill] sm:$0xff] }
 0x113   :  { %565 = vmatprep.subr.bf16.mxu0 %v525_v62  ;;  %646 = vmatprep.subr.bf16.mxu1 %v527_v61  ;;  %v519_v61 = vpack.c.bf16 %v479_v45, %v475_v49  ;;  %v472_v62 = vmax.f32 %v1263_v28, 0.0  ;;  %v463_v28 = vmax.f32 %v1245_v19, 0.0  ;;  %v448_v12 = vmax.f32 %v1591_v55, 0.0 }
 0x114   :  { %566 = vmatpush1.bf16.msra.mxu0 %v524_v3  ;;  %647 = vmatpush1.bf16.msra.mxu1 %v526_v1  ;;  %v474_v1 = vmax.f32 %v1265_v29, 0.0  ;;  %v465_v3 = vmax.f32 %v1251_v22, 0.0  ;;  %v515_v29 = vpack.c.bf16 %v471_v47, %v467_v30  ;;  %v466_v22 = vmax.f32 %v1249_v21, 0.0 }
 0x115   :  { %567 = vmatprep.subr.bf16.mxu0 %v521_v52  ;;  %648 = vmatprep.subr.bf16.mxu1 %v523_v53  ;;  %v516_v26 = vpack.c.bf16 %v476_v2, %v472_v62  ;;  %v511_v21 = vpack.c.bf16 %v463_v28, %v459_v24  ;;  %v508_v40 = vpack.c.bf16 %v460_v25, %v456_v39  ;;  %v450_v13 = vmax.f32 %v1592_v56, 0.0  ;;  %v1049_v52 = vld [vmem:[%s1574_s4 + $0x8] sm:$0xff]   ;;  %v1050_v53 = vld [vmem:[%s1574_s4 + $0x10] sm:$0xff]   ;;  %s1056_s4 = smov 15  }
 0x116   :  { %v518_v27 = vpack.c.bf16 %v478_v38, %v474_v1  ;;  %v513_v32 = vpack.c.bf16 %v469_v34, %v465_v3  ;;  %v514_v19 = vpack.c.bf16 %v470_v5, %v466_v22  ;;  %v505_v43 = vpack.c.bf16 %v453_v36, %v449_v15 }
 0x117   :  { %v507_v54 = vpack.c.bf16 %v455_v20, %v451_v16  ;;  %v504_v6 = vpack.c.bf16 %v452_v17, %v448_v12  ;;  %v506_v7 = vpack.c.bf16 %v454_v10, %v450_v13  ;;  %v1601_v45 = vmov 0  }
 0x118   :  { %568 = vmatpush1.bf16.msra.mxu0 %v520_v42  ;;  %649 = vmatpush1.bf16.msra.mxu1 %v522_v41 }
 0x119   :  { %569 = vmatprep.subr.bf16.mxu0 %v517_v48  ;;  %650 = vmatprep.subr.bf16.mxu1 %v519_v61 }
 0x11c   :  { %570 = vmatpush1.bf16.msra.mxu0 %v516_v26  ;;  %651 = vmatpush1.bf16.msra.mxu1 %v518_v27 }
 0x11d   :  { %571 = vmatprep.subr.bf16.mxu0 %v513_v32  ;;  %652 = vmatprep.subr.bf16.mxu1 %v515_v29 }
 0x120   :  { %572 = vmatpush1.bf16.msra.mxu0 %v512_v35  ;;  %653 = vmatpush1.bf16.msra.mxu1 %v514_v19 }
 0x121   :  { %573 = vmatprep.subr.bf16.mxu0 %v509_v37  ;;  %654 = vmatprep.subr.bf16.mxu1 %v511_v21 }
 0x124   :  { %574 = vmatpush1.bf16.msra.mxu0 %v508_v40  ;;  %655 = vmatpush1.bf16.msra.mxu1 %v510_v11  ;;  %v1338_v40 = vpop.permute.xlu0 %761  ;;  %v1340_v11 = vpop.permute.xlu1 %30 }
 0x125   :  { %575 = vmatprep.subr.bf16.mxu0 %v505_v43  ;;  %656 = vmatprep.subr.bf16.mxu1 %v507_v54 }
 0x128   :  { %576 = vmatpush1.bf16.msra.mxu0 %v504_v6  ;;  %657 = vmatpush1.bf16.msra.mxu1 %v506_v7 }
 0x129   :  { %577 = vmatprep.subr.bf16.mxu0 %v1593_v57  ;;  %658 = vmatprep.subr.bf16.mxu1 %v1594_v8 }
 0x12c   :  { %578 = vmatpush1.bf16.msra.mxu0 %v1595_v9  ;;  %659 = vmatpush1.bf16.msra.mxu1 %v1596_v58 }
 0x12d   :  { %579 = vmatprep.subr.bf16.mxu0 %v1597_v59  ;;  %660 = vmatprep.subr.bf16.mxu1 %v1598_v60  ;;  %v35_v59 = vlaneseq }
 0x130   :  { %580 = vmatpush1.bf16.msra.mxu0 %v1599_v0  ;;  %661 = vmatpush1.bf16.msra.mxu1 %v1600_v44  ;;  %v1345_v0 = vand.u32 127, %v35_v59 }
 0x132   :  { %vm774_vm2 = vcmp.lt.s32.totalorder %v1345_v0, 17  ;;  %vm795_vm3 = vcmp.lt.s32.totalorder %v1345_v0, 16  ;;  %vm816_vm4 = vcmp.lt.s32.totalorder %v1345_v0, 15  ;;  %vm837_vm5 = vcmp.lt.s32.totalorder %v1345_v0, 1 }
 0x133   :  { %598 = vmatmul.mubr.bf16.vlgmr.msra.gmra.mxu0 %v1048_v63  ;;  %679 = vmatmul.mubr.bf16.vlgmr.msra.gmra.mxu1 %v1048_v63  ;;  %vm862_vm6 = vcmp.lt.s32.totalorder %v1345_v0, 127  ;;  %vm883_vm7 = vcmp.lt.s32.totalorder %v1345_v0, 113  ;;  %vm904_vm8 = vcmp.lt.s32.totalorder %v1345_v0, 112  ;;  %vm925_vm9 = vcmp.lt.s32.totalorder %v1345_v0, 111 }
 0x134   :  { %607 = vmatprep.mubr.bf16.mxu0 %v1601_v45  ;;  %688 = vmatprep.mubr.bf16.mxu1 %v1601_v45 }
 0x13b   :  { %608 = vmatmul.mubr.bf16.gmra.mxu0 %v1049_v52  ;;  %689 = vmatmul.mubr.bf16.gmra.mxu1 %v1049_v52 }
 0x13c   :  { %617 = vmatprep.mubr.bf16.mxu0 %v1601_v45  ;;  %698 = vmatprep.mubr.bf16.mxu1 %v1601_v45 }
 0x143   :  { %618 = vmatmul.mubr.bf16.gmra.mxu0 %v1050_v53  ;;  %699 = vmatmul.mubr.bf16.gmra.mxu1 %v1050_v53 }
 0x144   :  { %627 = vmatprep.mubr.bf16.mxu0 %v1601_v45  ;;  %708 = vmatprep.mubr.bf16.mxu1 %v1601_v45 }
 0x14b   :  { %628 = vmatmul.mubr.bf16.gmra.mxu0 %v1051_v50  ;;  %709 = vmatmul.mubr.bf16.gmra.mxu1 %v1051_v50  ;;  %v727_v50 = vld [vmem:[%s1576_s5] sm:$0xff] }
 0x14c   :  { %637 = vmatprep.mubr.bf16.mxu0 %v1601_v45  ;;  %718 = vmatprep.mubr.bf16.mxu1 %v1601_v45 }
 0x153   :  { %638 = vmatmul.mubr.bf16.gmra.mxu0 %v1052_v51  ;;  %719 = vmatmul.mubr.bf16.gmra.mxu1 %v1052_v51 }
 0x1f3   :  { %v599_v46 = vpop.f32.mrf.mxu0  ;;  %v680_v49 = vpop.f32.mrf.mxu1 }
 0x1f4   :  { %764 = vrot.lane.b32.xlu0 %v599_v46, %s1054_s20  ;;  %768 = vrot.lane.b32.xlu1 %v680_v49, %s1054_s20  ;;  %v728_v46 = vld [vmem:[%s1576_s5 + $0x8] sm:$0xff]  ;;  %v729_v49 = vld [vmem:[%s1576_s5 + $0x10] sm:$0xff] }
 0x1f5   :  { %v601_v2 = vpop.f32.mrf.mxu0  ;;  %v682_v38 = vpop.f32.mrf.mxu1 }
 0x1f7   :  { %v603_v42 = vpop.f32.mrf.mxu0  ;;  %v684_v41 = vpop.f32.mrf.mxu1 }
 0x1f8   :  { %770 = vrot.lane.b32.xlu0 %v682_v38, %s1054_s20  ;;  %766 = vrot.lane.b32.xlu1 %v601_v2, %s1054_s20 }
 0x1f9   :  { %v605_v34 = vpop.f32.mrf.mxu0  ;;  %v686_v47 = vpop.f32.mrf.mxu1 }
 0x1fb   :  { %v609_v48 = vpop.f32.mrf.mxu0  ;;  %v690_v61 = vpop.f32.mrf.mxu1 }
 0x1fc   :  { %789 = vrot.lane.b32.xlu0 %v605_v34, %s1055_s2  ;;  %787 = vrot.lane.b32.xlu1 %v603_v42, %s1055_s2  ;;  %v1062_v42 = vmov 839922192   ;;  %v730_v34 = vld [vmem:[%s1576_s5 + $0x18] sm:$0xff] }
 0x1fd   :  { %v611_v62 = vpop.f32.mrf.mxu0  ;;  %v692_v1 = vpop.f32.mrf.mxu1 }
 0x1ff   :  { %v613_v3 = vpop.f32.mrf.mxu0  ;;  %v694_v30 = vpop.f32.mrf.mxu1 }
 0x200   :  { %793 = vrot.lane.b32.xlu0 %v686_v47, %s1055_s2  ;;  %791 = vrot.lane.b32.xlu1 %v684_v41, %s1055_s2  ;;  %v1366_v41 = vunpack.c.l.s4 %v1062_v42 }
 0x201   :  { %v615_v4 = vpop.f32.mrf.mxu0  ;;  %v696_v5 = vpop.f32.mrf.mxu1 }
 0x203   :  { %v1330_v26 = vpop.f32.mrf.mxu0  ;;  %v1332_v27 = vpop.f32.mrf.mxu1 }
 0x204   :  { %810 = vrot.lane.b32.xlu0 %v611_v62, %s1056_s4  ;;  %808 = vrot.lane.b32.xlu1 %v609_v48, %s1056_s4  ;;  %v732_v48 = vld [vmem:[%s1576_s5 + $0x28] sm:$0xff]  ;;  %v731_v62 = vld [vmem:[%s1576_s5 + $0x20] sm:$0xff] }
 0x205   :  { %v1334_v31 = vpop.f32.mrf.mxu0  ;;  %v1336_v28 = vpop.f32.mrf.mxu1 }
 0x207   :  { %v623_v32 = vpop.f32.mrf.mxu0  ;;  %v704_v29 = vpop.f32.mrf.mxu1 }
 0x208   :  { %814 = vrot.lane.b32.xlu0 %v692_v1, %s1056_s4  ;;  %812 = vrot.lane.b32.xlu1 %v690_v61, %s1056_s4 }
 0x209   :  { %v625_v33 = vpop.f32.mrf.mxu0  ;;  %v706_v22 = vpop.f32.mrf.mxu1 }
 0x20b   :  { %v629_v23 = vpop.f32.mrf.mxu0  ;;  %v710_v24 = vpop.f32.mrf.mxu1 }
 0x20c   :  { %831 = vrot.lane.b32.xlu0 %v615_v4, %s1057_s21  ;;  %829 = vrot.lane.b32.xlu1 %v613_v3, %s1057_s21 }
 0x20d   :  { %v631_v25 = vpop.f32.mrf.mxu0  ;;  %v712_v18 = vpop.f32.mrf.mxu1 }
 0x20f   :  { %v633_v35 = vpop.f32.mrf.mxu0  ;;  %v714_v19 = vpop.f32.mrf.mxu1 }
 0x210   :  { %835 = vrot.lane.b32.xlu0 %v696_v5, %s1057_s21  ;;  %833 = vrot.lane.b32.xlu1 %v694_v30, %s1057_s21  ;;  %v733_v5 = vld [vmem:[%s1576_s5 + $0x30] sm:$0xff] }
 0x211   :  { %v635_v36 = vpop.f32.mrf.mxu0  ;;  %v716_v20 = vpop.f32.mrf.mxu1 }
 0x213   :  { %v639_v37 = vpop.f32.mrf.mxu0  ;;  %v720_v21 = vpop.f32.mrf.mxu1 }
 0x214   :  { %856 = vrot.lane.b32.xlu0 %v625_v33, %s1058_s22  ;;  %854 = vrot.lane.b32.xlu1 %v623_v32, %s1058_s22 }
 0x215   :  { %v641_v39 = vpop.f32.mrf.mxu0  ;;  %v722_v14 = vpop.f32.mrf.mxu1 }
 0x217   :  { %v643_v15 = vpop.f32.mrf.mxu0  ;;  %v724_v16 = vpop.f32.mrf.mxu1 }
 0x218   :  { %860 = vrot.lane.b32.xlu0 %v706_v22, %s1058_s22  ;;  %858 = vrot.lane.b32.xlu1 %v704_v29, %s1058_s22  ;;  %v1063_v22 = vmov 1985246804   ;;  %v739_v16 = vld [vmem:[%s1576_s5 + $0x60] sm:$0xff] }
 0x219   :  { %v644_v17 = vpop.f32.mrf.mxu0  ;;  %v725_v10 = vpop.f32.mrf.mxu1 }
 0x21c   :  { %877 = vrot.lane.b32.xlu0 %v631_v25, %s1059_s23  ;;  %875 = vrot.lane.b32.xlu1 %v629_v23, %s1059_s23  ;;  %v1391_v23 = vunpack.c.l.s4 %v1063_v22 }
 0x220   :  { %881 = vrot.lane.b32.xlu0 %v712_v18, %s1059_s23  ;;  %879 = vrot.lane.b32.xlu1 %v710_v24, %s1059_s23  ;;  %v735_v24 = vld [vmem:[%s1576_s5 + $0x40] sm:$0xff] }
 0x224   :  { %896 = vrot.lane.b32.xlu0 %v633_v35, %s1060_s24  ;;  %898 = vrot.lane.b32.xlu1 %v635_v36, %s1060_s24  ;;  %v734_v36 = vld [vmem:[%s1576_s5 + $0x38] sm:$0xff] }
 0x228   :  { %900 = vrot.lane.b32.xlu0 %v714_v19, %s1060_s24  ;;  %902 = vrot.lane.b32.xlu1 %v716_v20, %s1060_s24 }
 0x22c   :  { %917 = vrot.lane.b32.xlu0 %v639_v37, %s1061_s25  ;;  %919 = vrot.lane.b32.xlu1 %v641_v39, %s1061_s25 }
 0x230   :  { %921 = vrot.lane.b32.xlu0 %v720_v21, %s1061_s25  ;;  %923 = vrot.lane.b32.xlu1 %v722_v14, %s1061_s25  ;;  %v736_v21 = vld [vmem:[%s1576_s5 + $0x48] sm:$0xff]  ;;  %v737_v14 = vld [vmem:[%s1576_s5 + $0x50] sm:$0xff] }
 0x266   :  { %v765_v43 = vpop.permute.xlu0 %764  ;;  %v769_v54 = vpop.permute.xlu1 %768 }
 0x26a   :  { %v771_v55 = vpop.permute.xlu0 %770  ;;  %v767_v12 = vpop.permute.xlu1 %766 }
 0x26b   :  { %v778_v51 = vsel %vm774_vm2, %v771_v55, %v765_v43  ;;  %v776_v2 = vsel %vm774_vm2, %v767_v12, %v769_v54  ;;  %v777_v38 = vsel %vm774_vm2, %v765_v43, %v767_v12  ;;  %v775_v47 = vsel %vm774_vm2, %v769_v54, %v771_v55 }
 0x26c   :  { %v779_v3 = vmul.f32 %v778_v51, %v727_v50  ;;  %v780_v30 = vmul.f32 %v777_v38, %v728_v46  ;;  %v781_v4 = vmul.f32 %v776_v2, %v729_v49  ;;  %v782_v18 = vmul.f32 %v775_v47, %v730_v34  ;;  %v741_v50 = vld [vmem:[%s1576_s5 + $0x70] sm:$0xff] }
 0x26e   :  { %v790_v56 = vpop.permute.xlu0 %789  ;;  %v788_v13 = vpop.permute.xlu1 %787  ;;  %v783_v10 = vadd.f32 %v779_v3, %v1338_v40  ;;  %v784_v43 = vadd.f32 %v780_v30, %v1338_v40  ;;  %v785_v54 = vadd.f32 %v781_v4, %v1338_v40  ;;  %v786_v2 = vadd.f32 %v782_v18, %v1338_v40  ;;  %v744_v18 = vld [vmem:[%s1576_s5 + $0xa8] sm:$0xff] }
 0x26f   :  { %v798_v61 = vsel %vm795_vm3, %v788_v13, %v790_v56  ;;  %v34_v3 = vunpack.c.0.s8 %v1366_v41  ;;  %v1454_v40 = vshrl.u32 %v35_v59, 7 }
 0x270   :  { %v801_v35 = vmul.f32 %v798_v61, %v732_v48 }
 0x272   :  { %v794_v6 = vpop.permute.xlu0 %793  ;;  %v792_v7 = vpop.permute.xlu1 %791  ;;  %v805_v38 = vadd.f32 %v801_v35, %v784_v43  ;;  %v749_v43 = vld [vmem:[%s1576_s5 + $0xd0] sm:$0xff] }
 0x273   :  { %v799_v1 = vsel %vm795_vm3, %v794_v6, %v788_v13  ;;  %v797_v32 = vsel %vm795_vm3, %v790_v56, %v792_v7  ;;  %v796_v20 = vsel %vm795_vm3, %v792_v7, %v794_v6  ;;  %v738_v6 = vld [vmem:[%s1576_s5 + $0x58] sm:$0xff] }
 0x274   :  { %v800_v19 = vmul.f32 %v799_v1, %v731_v62  ;;  %v802_v37 = vmul.f32 %v797_v32, %v733_v5  ;;  %v803_v13 = vmul.f32 %v796_v20, %v734_v36  ;;  %v37_v20 = vsub.s32 %v34_v3, %v1454_v40 }
 0x276   :  { %v811_v57 = vpop.permute.xlu0 %810  ;;  %v809_v8 = vpop.permute.xlu1 %808  ;;  %v804_v46 = vadd.f32 %v800_v19, %v783_v10  ;;  %v806_v42 = vadd.f32 %v802_v37, %v785_v54  ;;  %v807_v30 = vadd.f32 %v803_v13, %v786_v2  ;;  %v745_v37 = vld [vmem:[%s1576_s5 + $0xb0] sm:$0xff]  ;;  %v754_v2 = vld [vmem:[%s1576_s5 + $0xf8] sm:$0xff] }
 0x277   :  { %v819_v39 = vsel %vm816_vm4, %v809_v8, %v811_v57 }
 0x278   :  { %v822_v49 = vmul.f32 %v819_v39, %v736_v21 }
 0x27a   :  { %v815_v9 = vpop.permute.xlu0 %814  ;;  %v813_v58 = vpop.permute.xlu1 %812  ;;  %v826_v4 = vadd.f32 %v822_v49, %v805_v38 }
 0x27b   :  { %v820_v25 = vsel %vm816_vm4, %v815_v9, %v809_v8  ;;  %v818_v15 = vsel %vm816_vm4, %v811_v57, %v813_v58  ;;  %v817_v7 = vsel %vm816_vm4, %v813_v58, %v815_v9  ;;  %v740_v57 = vld [vmem:[%s1576_s5 + $0x68] sm:$0xff] }
 0x27c   :  { %v821_v55 = vmul.f32 %v820_v25, %v735_v24  ;;  %v823_v9 = vmul.f32 %v818_v15, %v737_v14  ;;  %v824_v48 = vmul.f32 %v817_v7, %v738_v6  ;;  %v44_v24 = vunpack.c.0.s8 %v1391_v23  ;;  %v746_v15 = vld [vmem:[%s1576_s5 + $0xb8] sm:$0xff]  ;;  %v26_v23 = vld [vmem:[%s1577_s0] sm:$0xff] }
 0x27d   :  { %v750_v6 = vld [vmem:[%s1576_s5 + $0xd8] sm:$0xff] }
 0x27e   :  { %v1342_v60 = vpop.permute.xlu0 %831  ;;  %v830_v63 = vpop.permute.xlu1 %829  ;;  %v825_v47 = vadd.f32 %v821_v55, %v804_v46  ;;  %v827_v5 = vadd.f32 %v823_v9, %v806_v42  ;;  %v828_v59 = vadd.f32 %v824_v48, %v807_v30  ;;  %v755_v48 = vld [vmem:[%s1576_s5 + $0x100] sm:$0xff] }
 0x27f   :  { %v840_v8 = vsel %vm837_vm5, %v830_v63, %v1342_v60 }
 0x282   :  { %v1347_v44 = vpop.permute.xlu0 %835  ;;  %v1349_v45 = vpop.permute.xlu1 %833 }
 0x283   :  { %v841_v17 = vsel %vm837_vm5, %v1347_v44, %v830_v63  ;;  %v839_v51 = vsel %vm837_vm5, %v1342_v60, %v1349_v45  ;;  %v742_v63 = vld [vmem:[%s1576_s5 + $0x78] sm:$0xff]  ;;  %v838_v34 = vsel %vm837_vm5, %v1349_v45, %v1347_v44  ;;  %v843_v60 = vmul.f32 %v840_v8, %v740_v57  ;;  %v743_v44 = vld [vmem:[%s1576_s5 + $0xa0] sm:$0xff] }
 0x284   :  { %v842_v58 = vmul.f32 %v841_v17, %v739_v16  ;;  %v844_v61 = vmul.f32 %v839_v51, %v741_v50  ;;  %v845_v22 = vmul.f32 %v838_v34, %v742_v63 }
 0x285   :  { %v847_v41 = vadd.f32 %v843_v60, %v826_v4 }
 0x286   :  { %v1353_v52 = vpop.permute.xlu0 %856  ;;  %v1355_v53 = vpop.permute.xlu1 %854  ;;  %v846_v32 = vadd.f32 %v842_v58, %v825_v47  ;;  %v848_v25 = vadd.f32 %v844_v61, %v827_v5  ;;  %v849_v39 = vadd.f32 %v845_v22, %v828_v59  ;;  %v47_v59 = vsub.s32 %v44_v24, %v1454_v40 }
 0x287   :  { %v865_v45 = vsel %vm862_vm6, %v1355_v53, %v1353_v52  ;;  %v851_v54 = vadd.f32 %v847_v41, %v1334_v31  ;;  %v38_v41 = vrot.slane %v1340_v11, %v37_v20 }
 0x288   :  { %v867_v14 = vmul.f32 %v865_v45, %v743_v44  ;;  %v852_v55 = vadd.f32 %v848_v25, %v1332_v27  ;;  %v752_v27 = vld [vmem:[%s1576_s5 + $0xe8] sm:$0xff]  ;;  %v853_v63 = vadd.f32 %v849_v39, %v1336_v28 }
 0x28a   :  { %v1387_v29 = vpop.permute.xlu0 %860  ;;  %v1389_v33 = vpop.permute.xlu1 %858 }
 0x28b   :  { %v864_v35 = vsel %vm862_vm6, %v1353_v52, %v1389_v33  ;;  %v863_v21 = vsel %vm862_vm6, %v1389_v33, %v1387_v29  ;;  %v850_v52 = vadd.f32 %v846_v32, %v1330_v26  ;;  %v866_v16 = vsel %vm862_vm6, %v1387_v29, %v1355_v53  ;;  %v747_v33 = vld [vmem:[%s1576_s5 + $0xc0] sm:$0xff]  ;;  %v748_v26 = vld [vmem:[%s1576_s5 + $0xc8] sm:$0xff] }
 0x28c   :  { %v868_v17 = vmul.f32 %v864_v35, %v744_v18  ;;  %v869_v13 = vmul.f32 %v863_v21, %v745_v37  ;;  %v870_v50 = vmul.f32 %v866_v16, %v746_v15  ;;  %v756_v18 = vld [vmem:[%s1576_s5 + $0x108] sm:$0xff]  ;;  %v757_v35 = vld [vmem:[%s1576_s5 + $0x110] sm:$0xff] }
 0x28d   :  { %v871_v42 = vadd.f32 %v867_v14, %v850_v52  ;;  %v27_v21 = vld [vmem:[%s1577_s0 + $0x8] sm:$0xff] }
 0x28e   :  { %v878_v12 = vpop.permute.xlu0 %877  ;;  %v1424_v56 = vpop.permute.xlu1 %875  ;;  %v872_v34 = vadd.f32 %v868_v17, %v851_v54  ;;  %v873_v60 = vadd.f32 %v869_v13, %v852_v55  ;;  %v874_v4 = vadd.f32 %v870_v50, %v853_v63 }
 0x28f   :  { %v886_v10 = vsel %vm883_vm7, %v1424_v56, %v878_v12 }
 0x290   :  { %v888_v49 = vmul.f32 %v886_v10, %v747_v33 }
 0x292   :  { %v882_v62 = vpop.permute.xlu0 %881  ;;  %v880_v1 = vpop.permute.xlu1 %879  ;;  %v892_v22 = vadd.f32 %v888_v49, %v871_v42 }
 0x293   :  { %v884_v53 = vsel %vm883_vm7, %v880_v1, %v882_v62  ;;  %v885_v29 = vsel %vm883_vm7, %v878_v12, %v880_v1  ;;  %v887_v7 = vsel %vm883_vm7, %v882_v62, %v1424_v56  ;;  %v751_v12 = vld [vmem:[%s1576_s5 + $0xe0] sm:$0xff]  ;;  %v753_v56 = vld [vmem:[%s1576_s5 + $0xf0] sm:$0xff] }
 0x294   :  { %v889_v9 = vmul.f32 %v885_v29, %v748_v26  ;;  %v890_v58 = vmul.f32 %v884_v53, %v749_v43  ;;  %v891_v47 = vmul.f32 %v887_v7, %v750_v6  ;;  %v40_v26 = vmul.f32 %v38_v41, %v26_v23 }
 0x295   :  { %v48_v43 = vrot.slane %v1340_v11, %v47_v59  ;;  %v41_v53 = vmul.f32 %v38_v41, %v27_v21 }
 0x296   :  { %v897_v19 = vpop.permute.xlu0 %896  ;;  %v899_v36 = vpop.permute.xlu1 %898  ;;  %v893_v44 = vadd.f32 %v889_v9, %v872_v34  ;;  %v894_v28 = vadd.f32 %v890_v58, %v873_v60  ;;  %v895_v25 = vadd.f32 %v891_v47, %v874_v4 }
 0x297   :  { %v907_v31 = vsel %vm904_vm8, %v897_v19, %v899_v36  ;;  %v51_v50 = vadd.f32 %v48_v43, %v41_v53 }
 0x298   :  { %v909_v61 = vmul.f32 %v907_v31, %v751_v12 }
 0x29a   :  { %v901_v57 = vpop.permute.xlu0 %900  ;;  %v903_v8 = vpop.permute.xlu1 %902  ;;  %v913_v40 = vadd.f32 %v909_v61, %v892_v22 }
 0x29b   :  { %v906_v51 = vsel %vm904_vm8, %v899_v36, %v901_v57  ;;  %v905_v46 = vsel %vm904_vm8, %v901_v57, %v903_v8  ;;  %v908_v38 = vsel %vm904_vm8, %v903_v8, %v897_v19  ;;  %v758_v19 = vld [vmem:[%s1576_s5 + $0x118] sm:$0xff]  ;;  %v50_v8 = vadd.f32 %v48_v43, %v40_v26 }
 0x29c   :  { %v910_v62 = vmul.f32 %v906_v51, %v752_v27  ;;  %v911_v1 = vmul.f32 %v905_v46, %v753_v56  ;;  %v912_v5 = vmul.f32 %v908_v38, %v754_v2 }
 0x29e   :  { %v918_v3 = vpop.permute.xlu0 %917  ;;  %v920_v30 = vpop.permute.xlu1 %919  ;;  %v914_v24 = vadd.f32 %v910_v62, %v893_v44  ;;  %v915_v36 = vadd.f32 %v911_v1, %v894_v28  ;;  %v916_v39 = vadd.f32 %v912_v5, %v895_v25 }
 0x29f   :  { %v928_v32 = vsel %vm925_vm9, %v918_v3, %v920_v30 }
 0x2a0   :  { %v930_v45 = vmul.f32 %v928_v32, %v755_v48 }
 0x2a2   :  { %v922_v20 = vpop.permute.xlu0 %921  ;;  %v924_v37 = vpop.permute.xlu1 %923  ;;  %v934_v16 = vadd.f32 %v930_v45, %v913_v40 }
 0x2a3   :  { %v927_v52 = vsel %vm925_vm9, %v920_v30, %v922_v20  ;;  %v926_v14 = vsel %vm925_vm9, %v922_v20, %v924_v37  ;;  %v929_v15 = vsel %vm925_vm9, %v924_v37, %v918_v3 }
 0x2a4   :  { %v931_v17 = vmul.f32 %v927_v52, %v756_v18  ;;  %v932_v33 = vmul.f32 %v926_v14, %v757_v35  ;;  %v933_v10 = vmul.f32 %v929_v15, %v758_v19  ;;  %v938_v13 = vadd.f32 1.0, %v934_v16 }
 0x2a6   :  { %v935_v29 = vadd.f32 %v931_v17, %v914_v24  ;;  %v936_v54 = vadd.f32 %v932_v33, %v915_v36  ;;  %v937_v55 = vadd.f32 %v933_v10, %v916_v39 }
 0x2a8   :  { %v939_v6 = vadd.f32 1.0, %v935_v29  ;;  %v940_v7 = vadd.f32 1.0, %v936_v54  ;;  %v941_v57 = vadd.f32 1.0, %v937_v55  ;;  %v956_v27 = vcombine.high %v934_v16, %v935_v29 }
 0x2a9   :  { %v957_v56 = vcombine.high %v936_v54, %v937_v55 }
 0x2aa   :  { %v946_v12 = vcombine.low %v938_v13, %v939_v6  ;;  %v947_v0 = vcombine.low %v940_v7, %v941_v57 }
 0x2ac   :  { %v950_v31 = vmul.f32 %v946_v12, %v50_v8  ;;  %v951_v51 = vmul.f32 %v947_v0, %v51_v50 }
 0x2ae   :  { %v960_v46 = vadd.f32 %v956_v27, %v950_v31  ;;  %v961_v49 = vadd.f32 %v957_v56, %v951_v51 }
 0x2b0   :  { %962 = vst [vmem:[%s1578_s6] sm:$0xff] %v960_v46  ;;  %963 = vst [vmem:[%s1578_s6 + $0x8] sm:$0xff] %v961_v49 }

</bundles_post_ra>
